<compile_context>
chip_gen: v7x
topology: tpu7x:2x2x1
jax: 0.10.0
libtpu: 0.0.40
codegen_flags: <defaults>
</compile_context>

<pallas_src>
import functools
import numpy as np
import jax
import jax.numpy as jnp
from jax import lax
from jax.experimental import pallas as pl
from jax.experimental.pallas import tpu as pltpu


_PARALLEL1 = pltpu.CompilerParams(dimension_semantics=("parallel",))


# ----------------------------- Pallas kernels ------------------------------ #

def _enhancer_fused_kernel(x_ref, w1_ref, s_ref, g_ref, bta_ref, w2_ref, o_ref):
    # x_ref : (1, C, T, HW)  input already in (b, c, t, h*w) layout
    # w1_ref: (k, C, C)      Conv1d weight, tap-major
    # s_ref : (k, T, T)      precomputed temporal shift matrices ('same' padding)
    # g_ref, bta_ref: (C, T) LayerNorm affine
    # w2_ref: (C, C)         1x1 Conv1d weight
    # o_ref : (1, C, T, HW)  modulated output (same layout as input)
    C, T, HW = x_ref.shape[1], x_ref.shape[2], x_ref.shape[3]
    k = w1_ref.shape[0]

    x = x_ref[0].astype(jnp.float32)                        # (C, T, HW)

    # adaptive_avg_pool2d((1,1)) -> (C, T); mean over the H*W lane axis.
    pooled = jnp.sum(x, axis=2) * (1.0 / float(HW))         # (C, T)

    # Conv1d(k, padding='same', bias=False): per tap, shift in time via a
    # constant (T, T) selection matrix (pure MXU work), then mix channels.
    acc = jnp.zeros((C, T), jnp.float32)
    for j in range(k):
        shifted = jnp.dot(pooled, s_ref[j], preferred_element_type=jnp.float32)
        acc = acc + jnp.dot(w1_ref[j], shifted, preferred_element_type=jnp.float32)

    # LayerNorm([C, T]) -- biased variance, eps = 1e-5, affine (C, T).
    n = float(C * T)
    mu = jnp.sum(jnp.sum(acc, axis=1, keepdims=True), axis=0, keepdims=True) / n
    d = acc - mu
    var = jnp.sum(jnp.sum(d * d, axis=1, keepdims=True), axis=0, keepdims=True) / n
    y = jnp.tanh(d * lax.rsqrt(var + 1e-5) * g_ref[...] + bta_ref[...])

    # 1x1 Conv1d (no bias) + Sigmoid -> local activation (C, T).
    act = jax.nn.sigmoid(jnp.dot(w2_ref[...], y, preferred_element_type=jnp.float32))

    # Modulate x (broadcast over the H*W lane axis) and store.
    o_ref[0] = (x * act[:, :, None]).astype(o_ref.dtype)


def _conv3x3_fused_kernel(*refs, has_res):
    # p_ref: (1, 9*Cin, nb*HW) im2col patches (lane-dense), w_ref: (Cout, 9*Cin),
    # b_ref: (Cout, 1), optional r_ref: (1, Cout, nb*HW), o_ref: (1, Cout, nb*HW)
    if has_res:
        p_ref, w_ref, b_ref, r_ref, o_ref = refs
    else:
        p_ref, w_ref, b_ref, o_ref = refs
    acc = jnp.dot(w_ref[...], p_ref[0], preferred_element_type=jnp.float32)
    y = jnp.tanh(acc + b_ref[...].astype(jnp.float32))
    if has_res:
        y = y + r_ref[0].astype(jnp.float32)     # fused skip connection (free VPU work)
    o_ref[0] = y.astype(o_ref.dtype)


# ------------------------------ op wrappers -------------------------------- #

def local_tempo_enhancer(x, p, use_pallas=True):
    # x: (B, T, C, H, W).  Returns the PyTorch `.view(b, t, c, h, w)` result of
    # Local_Tempo_Enhancer.forward (including the flat reinterpretation of the
    # (b, c, t, h, w)-contiguous modulated tensor).
    B, T, C, H, W = x.shape
    if not use_pallas:
        new_x = jnp.transpose(x, (0, 2, 1, 3, 4))                 # (B, C, T, H, W)
        pooled = jnp.mean(new_x, axis=(3, 4))                     # (B, C, T)
        y = lax.conv_general_dilated(pooled, p["w1"], (1,), "SAME",
                                     dimension_numbers=("NCH", "OIH", "NCH"))
        mu = jnp.mean(y, axis=(1, 2), keepdims=True)
        var = jnp.mean((y - mu) ** 2, axis=(1, 2), keepdims=True)
        y = jnp.tanh((y - mu) * lax.rsqrt(var + 1e-5)
                     * p["gamma"][None] + p["beta"][None])
        act = jax.nn.sigmoid(jnp.einsum("oi,bit->bot", p["w2"][:, :, 0], y))
        m = new_x * act[:, :, :, None, None]                      # (B, C, T, H, W)
        return m.reshape(B, T, C, H, W)                           # torch .view semantics

    k = p["w1"].shape[2]
    pad = (k - 1) // 2
    # Precompute tap shift matrices S[j][u, t] = 1 iff t == u + pad - j
    # ('same' zero-padding of the pooled signal, realized as tiny matmuls).
    S = np.zeros((k, T, T), np.float32)
    for j in range(k):
        for u in range(T):
            t = u + pad - j
            if 0 <= t < T:
                S[j, u, t] = 1.0
    S = jnp.asarray(S)
    w1t = jnp.transpose(p["w1"], (2, 0, 1))                       # (k, Cout, Cin)
    w2m = p["w2"][:, :, 0]                                        # (C, C)

    HW = H * W
    x_bcthw = jnp.transpose(x, (0, 2, 1, 3, 4)).reshape(B, C, T, HW)
    out = pl.pallas_call(
        _enhancer_fused_kernel,
        out_shape=jax.ShapeDtypeStruct((B, C, T, HW), x.dtype),
        grid=(B,),
        in_specs=[pl.BlockSpec((1, C, T, HW), lambda b: (b, 0, 0, 0)),
                  pl.BlockSpec((k, C, C), lambda b: (0, 0, 0)),
                  pl.BlockSpec((k, T, T), lambda b: (0, 0, 0)),
                  pl.BlockSpec((C, T), lambda b: (0, 0)),
                  pl.BlockSpec((C, T), lambda b: (0, 0)),
                  pl.BlockSpec((C, C), lambda b: (0, 0))],
        out_specs=pl.BlockSpec((1, C, T, HW), lambda b: (b, 0, 0, 0)),
        compiler_params=_PARALLEL1,
    )(x_bcthw, w1t, S, p["gamma"], p["beta"], w2m)
    # `out` is the (b, c, t, h, w)-contiguous modulated tensor; the PyTorch
    # `.view(b, t, c, h, w)` is a free (bitcast) reshape here.
    return out.reshape(B, T, C, H, W)


def conv2d_3x3_tanh(x, w, b, residual=None, use_pallas=True, nb=None):
    # x: (N, Cin, H, W); w: (Cout, Cin, 3, 3) (PyTorch OIHW); b: (Cout,)
    # residual: optional (N, Cout, H, W) added AFTER the tanh (skip connection).
    N, Cin, H, W = x.shape
    Cout = w.shape[0]
    if not use_pallas:
        y = lax.conv_general_dilated(x, w, (1, 1), "SAME",
                                     dimension_numbers=("NCHW", "OIHW", "NCHW"))
        y = jnp.tanh(y + b[None, :, None, None])
        return y + residual if residual is not None else y

    if nb is None:
        nb = N // 2 if N % 2 == 0 else N     # grid of 2 keeps both v7x TCs busy
    assert N % nb == 0
    nblk, HW = N // nb, H * W

    # im2col (wrapper-side layout plumbing, fused by XLA), packed lane-dense as
    # (nblk, 9*Cin, nb*HW): nb images folded into the matmul N / lane dimension.
    xp = jnp.pad(x, ((0, 0), (0, 0), (1, 1), (1, 1)))
    taps = [xp[:, :, kh:kh + H, kw:kw + W] for kh in range(3) for kw in range(3)]
    patches = jnp.stack(taps, axis=1).reshape(N, 9 * Cin, HW)
    patches = (patches.reshape(nblk, nb, 9 * Cin, HW)
               .transpose(0, 2, 1, 3).reshape(nblk, 9 * Cin, nb * HW))
    wm = jnp.transpose(w, (0, 2, 3, 1)).reshape(Cout, 9 * Cin)   # columns [tap][cin]
    bb = b.reshape(Cout, 1)

    inputs = [patches, wm, bb]
    in_specs = [pl.BlockSpec((1, 9 * Cin, nb * HW), lambda i: (i, 0, 0)),
                pl.BlockSpec((Cout, 9 * Cin), lambda i: (0, 0)),
                pl.BlockSpec((Cout, 1), lambda i: (0, 0))]
    has_res = residual is not None
    if has_res:
        r = (residual.reshape(nblk, nb, Cout, HW)
             .transpose(0, 2, 1, 3).reshape(nblk, Cout, nb * HW))
        inputs.append(r)
        in_specs.append(pl.BlockSpec((1, Cout, nb * HW), lambda i: (i, 0, 0)))

    out = pl.pallas_call(
        functools.partial(_conv3x3_fused_kernel, has_res=has_res),
        out_shape=jax.ShapeDtypeStruct((nblk, Cout, nb * HW), x.dtype),
        grid=(nblk,),
        in_specs=in_specs,
        out_specs=pl.BlockSpec((1, Cout, nb * HW), lambda i: (i, 0, 0)),
        compiler_params=_PARALLEL1,
    )(*inputs)
    # Unpack the lane-dense layout back to NCHW.
    return (out.reshape(nblk, Cout, nb, HW)
            .transpose(0, 2, 1, 3).reshape(N, Cout, H, W))


# ------------------------- temporal shifts (glue) --------------------------- #

def tsm_shift(x, shift_factor, fold_div=3):
    B, T, C, H, W = x.shape
    fold = C // fold_div
    k = int(np.floor(T * shift_factor))
    assert k >= 1, "TSM requires floor(T * shift_factor) >= 1"
    g0 = jnp.concatenate([x[:, k:, :fold],
                          jnp.zeros_like(x[:, :k, :fold])], axis=1)
    g1 = jnp.concatenate([jnp.zeros_like(x[:, :k, fold:2 * fold]),
                          x[:, :T - k, fold:2 * fold]], axis=1)
    g2 = x[:, :, 2 * fold:]
    return jnp.concatenate([g0, g1, g2], axis=2)


def tsm_new_shift(x, shift_factor, elements=3):
    B, T, C, H, W = x.shape
    idx_for = np.arange(0, C, elements)
    if idx_for[-1] >= C - 1:
        idx_for = idx_for[:-1]
    idx_back = idx_for + 1
    if idx_back[-1] >= C - 1:
        idx_back = idx_back[:-1]
    k = int(np.floor(T * shift_factor))
    out = x
    # NOTE: the reference writes the forward shift and immediately overwrites it
    # with zeros; reproduced faithfully (net effect: zeros in those positions).
    out = out.at[:, :T - k, idx_for].set(0.0)
    out = out.at[:, k:, idx_back].set(x[:, :T - k, idx_back])
    out = out.at[:, :k, idx_back].set(0.0)
    return out


# --------------------------- module-level forward --------------------------- #

def tsm_block_adv_forward(x, params, *, shift_factor, skip, group_on,
                          activate=True, use_pallas=True, nb=None):
    # TSM_Block_Adv.forward with in_channels == out_channels.
    B, T, C, H, W = x.shape
    F0 = local_tempo_enhancer(x, params["enh"], use_pallas) if activate else x
    shift = tsm_new_shift if group_on else tsm_shift
    F1 = shift(F0, shift_factor)
    res = F0.reshape(B * T, C, H, W) if skip else None      # skip add fused in-kernel
    F1 = conv2d_3x3_tanh(F1.reshape(B * T, C, H, W), params["w"], params["b"],
                         residual=res, use_pallas=use_pallas, nb=nb)
    return F1.reshape(B, T, C, H, W)


# ------------------------------- parameters --------------------------------- #

def make_params(key, in_planes, frame_depth):
    C, T = in_planes, frame_depth
    k = T - 3 if T % 2 == 0 else T - 2
    ks = jax.random.split(key, 6)
    f = jnp.float32
    return {
        "enh": {
            "w1": (0.3 * jax.random.normal(ks[0], (C, C, k))).astype(f),
            "gamma": (1.0 + 0.1 * jax.random.normal(ks[1], (C, T))).astype(f),
            "beta": (0.1 * jax.random.normal(ks[2], (C, T))).astype(f),
            "w2": (0.3 * jax.random.normal(ks[3], (C, C, 1))).astype(f),
        },
        "w": (0.2 * jax.random.normal(ks[4], (C, C, 3, 3))).astype(f),
        "b": (0.1 * jax.random.normal(ks[5], (C,))).astype(f),
    }


if __name__ == "__main__":
    # TSM_Block_Adv(in_channels=6, out_channels=6, frame_depth=8, skip=True,
    #               shift_factor=0.25, group_on=False, on=True)
    B, T, C, H, W = 2, 8, 6, 8, 8
    shift_factor, skip, group_on = 0.25, True, False

    k_par, k_x = jax.random.split(jax.random.PRNGKey(0))
    params = make_params(k_par, C, T)
    x = jax.random.normal(k_x, (B, T, C, H, W), dtype=jnp.float32)

    fwd = jax.jit(functools.partial(
        tsm_block_adv_forward, shift_factor=shift_factor, skip=skip,
        group_on=group_on, use_pallas=True))
    out = jax.block_until_ready(fwd(x, params))
    assert out.shape == (B, T, C, H, W), out.shape

    # Pure-JAX reference (same glue, XLA convs) for a correctness check.
    ref_fwd = jax.jit(functools.partial(
        tsm_block_adv_forward, shift_factor=shift_factor, skip=skip,
        group_on=group_on, use_pallas=False))
    ref = jax.block_until_ready(ref_fwd(x, params))
    np.testing.assert_allclose(np.asarray(out), np.asarray(ref),
                               rtol=1e-3, atol=1e-3)

    print("KERNEL_OK")
</pallas_src>

<mosaic_0001>
module attributes {stable_mosaic.version = 11 : i64} {
  func.func @_enhancer_fused_kernel(%arg0: i32, %arg1: memref<1x6x8x64xf32, #tpu.memory_space<vmem>>, %arg2: memref<5x6x6xf32, #tpu.memory_space<vmem>>, %arg3: memref<5x8x8xf32, #tpu.memory_space<vmem>>, %arg4: memref<6x8xf32, #tpu.memory_space<vmem>>, %arg5: memref<6x8xf32, #tpu.memory_space<vmem>>, %arg6: memref<6x6xf32, #tpu.memory_space<vmem>>, %arg7: memref<1x6x8x64xf32, #tpu.memory_space<vmem>>) attributes {dimension_semantics = [#tpu.dimension_semantics<parallel>], iteration_bounds = array<i64: 2>, scalar_prefetch = 0 : i64, scratch_operands = 0 : i64, tpu.core_type = #tpu.core_type<tc>, window_params = [{transform_indices = @transform_0, window_bounds = array<i64: 1, 6, 8, 64>}, {pipeline_mode = #tpu.pipeline_mode<synchronous>, transform_indices = @transform_1, window_bounds = array<i64: 5, 6, 6>}, {pipeline_mode = #tpu.pipeline_mode<synchronous>, transform_indices = @transform_2, window_bounds = array<i64: 5, 8, 8>}, {pipeline_mode = #tpu.pipeline_mode<synchronous>, transform_indices = @transform_3, window_bounds = array<i64: 6, 8>}, {pipeline_mode = #tpu.pipeline_mode<synchronous>, transform_indices = @transform_4, window_bounds = array<i64: 6, 8>}, {pipeline_mode = #tpu.pipeline_mode<synchronous>, transform_indices = @transform_5, window_bounds = array<i64: 6, 6>}, {transform_indices = @transform_6, window_bounds = array<i64: 1, 6, 8, 64>}]} {
    %c0 = arith.constant 0 : index
    %c0_0 = arith.constant 0 : index
    %c0_1 = arith.constant 0 : index
    %c0_2 = arith.constant 0 : index
    %0 = vector.load %arg1[%c0, %c0_0, %c0_1, %c0_2] : memref<1x6x8x64xf32, #tpu.memory_space<vmem>>, vector<1x6x8x64xf32>
    %1 = vector.shape_cast %0 : vector<1x6x8x64xf32> to vector<6x8x64xf32>
    %cst = arith.constant dense<0.000000e+00> : vector<6x8xf32>
    %2 = vector.multi_reduction <add>, %1, %cst [2] : vector<6x8x64xf32> to vector<6x8xf32>
    %cst_3 = arith.constant 1.562500e-02 : f32
    %3 = vector.broadcast %cst_3 : f32 to vector<6x8xf32>
    %4 = arith.mulf %2, %3 : vector<6x8xf32>
    %cst_4 = arith.constant 0.000000e+00 : f32
    %5 = vector.broadcast %cst_4 : f32 to vector<6x8xf32>
    %c0_5 = arith.constant 0 : index
    %c0_6 = arith.constant 0 : index
    %c0_7 = arith.constant 0 : index
    %6 = vector.load %arg3[%c0_5, %c0_6, %c0_7] : memref<5x8x8xf32, #tpu.memory_space<vmem>>, vector<1x8x8xf32>
    %7 = vector.shape_cast %6 : vector<1x8x8xf32> to vector<8x8xf32>
    %cst_8 = arith.constant dense<0.000000e+00> : vector<6x8xf32>
    %8 = tpu.matmul %4, %7, %cst_8 {dimension_numbers = #tpu.dot_dimension_numbers<[1], [0], [0], [1], [0, 0, 1, 1], [], []>} : vector<6x8xf32>, vector<8x8xf32>, vector<6x8xf32> -> vector<6x8xf32>
    %c0_9 = arith.constant 0 : index
    %c0_10 = arith.constant 0 : index
    %c0_11 = arith.constant 0 : index
    %9 = vector.load %arg2[%c0_9, %c0_10, %c0_11] : memref<5x6x6xf32, #tpu.memory_space<vmem>>, vector<1x6x6xf32>
    %10 = vector.shape_cast %9 : vector<1x6x6xf32> to vector<6x6xf32>
    %cst_12 = arith.constant dense<0.000000e+00> : vector<6x8xf32>
    %11 = tpu.matmul %10, %8, %cst_12 {dimension_numbers = #tpu.dot_dimension_numbers<[1], [0], [0], [1], [0, 0, 1, 1], [], []>} : vector<6x6xf32>, vector<6x8xf32>, vector<6x8xf32> -> vector<6x8xf32>
    %12 = arith.addf %5, %11 : vector<6x8xf32>
    %c1 = arith.constant 1 : index
    %c0_13 = arith.constant 0 : index
    %c0_14 = arith.constant 0 : index
    %13 = vector.load %arg3[%c1, %c0_13, %c0_14] : memref<5x8x8xf32, #tpu.memory_space<vmem>>, vector<1x8x8xf32>
    %14 = vector.shape_cast %13 : vector<1x8x8xf32> to vector<8x8xf32>
    %cst_15 = arith.constant dense<0.000000e+00> : vector<6x8xf32>
    %15 = tpu.matmul %4, %14, %cst_15 {dimension_numbers = #tpu.dot_dimension_numbers<[1], [0], [0], [1], [0, 0, 1, 1], [], []>} : vector<6x8xf32>, vector<8x8xf32>, vector<6x8xf32> -> vector<6x8xf32>
    %c1_16 = arith.constant 1 : index
    %c0_17 = arith.constant 0 : index
    %c0_18 = arith.constant 0 : index
    %16 = vector.load %arg2[%c1_16, %c0_17, %c0_18] : memref<5x6x6xf32, #tpu.memory_space<vmem>>, vector<1x6x6xf32>
    %17 = vector.shape_cast %16 : vector<1x6x6xf32> to vector<6x6xf32>
    %cst_19 = arith.constant dense<0.000000e+00> : vector<6x8xf32>
    %18 = tpu.matmul %17, %15, %cst_19 {dimension_numbers = #tpu.dot_dimension_numbers<[1], [0], [0], [1], [0, 0, 1, 1], [], []>} : vector<6x6xf32>, vector<6x8xf32>, vector<6x8xf32> -> vector<6x8xf32>
    %19 = arith.addf %12, %18 : vector<6x8xf32>
    %c2 = arith.constant 2 : index
    %c0_20 = arith.constant 0 : index
    %c0_21 = arith.constant 0 : index
    %20 = vector.load %arg3[%c2, %c0_20, %c0_21] : memref<5x8x8xf32, #tpu.memory_space<vmem>>, vector<1x8x8xf32>
    %21 = vector.shape_cast %20 : vector<1x8x8xf32> to vector<8x8xf32>
    %cst_22 = arith.constant dense<0.000000e+00> : vector<6x8xf32>
    %22 = tpu.matmul %4, %21, %cst_22 {dimension_numbers = #tpu.dot_dimension_numbers<[1], [0], [0], [1], [0, 0, 1, 1], [], []>} : vector<6x8xf32>, vector<8x8xf32>, vector<6x8xf32> -> vector<6x8xf32>
    %c2_23 = arith.constant 2 : index
    %c0_24 = arith.constant 0 : index
    %c0_25 = arith.constant 0 : index
    %23 = vector.load %arg2[%c2_23, %c0_24, %c0_25] : memref<5x6x6xf32, #tpu.memory_space<vmem>>, vector<1x6x6xf32>
    %24 = vector.shape_cast %23 : vector<1x6x6xf32> to vector<6x6xf32>
    %cst_26 = arith.constant dense<0.000000e+00> : vector<6x8xf32>
    %25 = tpu.matmul %24, %22, %cst_26 {dimension_numbers = #tpu.dot_dimension_numbers<[1], [0], [0], [1], [0, 0, 1, 1], [], []>} : vector<6x6xf32>, vector<6x8xf32>, vector<6x8xf32> -> vector<6x8xf32>
    %26 = arith.addf %19, %25 : vector<6x8xf32>
    %c3 = arith.constant 3 : index
    %c0_27 = arith.constant 0 : index
    %c0_28 = arith.constant 0 : index
    %27 = vector.load %arg3[%c3, %c0_27, %c0_28] : memref<5x8x8xf32, #tpu.memory_space<vmem>>, vector<1x8x8xf32>
    %28 = vector.shape_cast %27 : vector<1x8x8xf32> to vector<8x8xf32>
    %cst_29 = arith.constant dense<0.000000e+00> : vector<6x8xf32>
    %29 = tpu.matmul %4, %28, %cst_29 {dimension_numbers = #tpu.dot_dimension_numbers<[1], [0], [0], [1], [0, 0, 1, 1], [], []>} : vector<6x8xf32>, vector<8x8xf32>, vector<6x8xf32> -> vector<6x8xf32>
    %c3_30 = arith.constant 3 : index
    %c0_31 = arith.constant 0 : index
    %c0_32 = arith.constant 0 : index
    %30 = vector.load %arg2[%c3_30, %c0_31, %c0_32] : memref<5x6x6xf32, #tpu.memory_space<vmem>>, vector<1x6x6xf32>
    %31 = vector.shape_cast %30 : vector<1x6x6xf32> to vector<6x6xf32>
    %cst_33 = arith.constant dense<0.000000e+00> : vector<6x8xf32>
    %32 = tpu.matmul %31, %29, %cst_33 {dimension_numbers = #tpu.dot_dimension_numbers<[1], [0], [0], [1], [0, 0, 1, 1], [], []>} : vector<6x6xf32>, vector<6x8xf32>, vector<6x8xf32> -> vector<6x8xf32>
    %33 = arith.addf %26, %32 : vector<6x8xf32>
    %c4 = arith.constant 4 : index
    %c0_34 = arith.constant 0 : index
    %c0_35 = arith.constant 0 : index
    %34 = vector.load %arg3[%c4, %c0_34, %c0_35] : memref<5x8x8xf32, #tpu.memory_space<vmem>>, vector<1x8x8xf32>
    %35 = vector.shape_cast %34 : vector<1x8x8xf32> to vector<8x8xf32>
    %cst_36 = arith.constant dense<0.000000e+00> : vector<6x8xf32>
    %36 = tpu.matmul %4, %35, %cst_36 {dimension_numbers = #tpu.dot_dimension_numbers<[1], [0], [0], [1], [0, 0, 1, 1], [], []>} : vector<6x8xf32>, vector<8x8xf32>, vector<6x8xf32> -> vector<6x8xf32>
    %c4_37 = arith.constant 4 : index
    %c0_38 = arith.constant 0 : index
    %c0_39 = arith.constant 0 : index
    %37 = vector.load %arg2[%c4_37, %c0_38, %c0_39] : memref<5x6x6xf32, #tpu.memory_space<vmem>>, vector<1x6x6xf32>
    %38 = vector.shape_cast %37 : vector<1x6x6xf32> to vector<6x6xf32>
    %cst_40 = arith.constant dense<0.000000e+00> : vector<6x8xf32>
    %39 = tpu.matmul %38, %36, %cst_40 {dimension_numbers = #tpu.dot_dimension_numbers<[1], [0], [0], [1], [0, 0, 1, 1], [], []>} : vector<6x6xf32>, vector<6x8xf32>, vector<6x8xf32> -> vector<6x8xf32>
    %40 = arith.addf %33, %39 : vector<6x8xf32>
    %cst_41 = arith.constant dense<0.000000e+00> : vector<6xf32>
    %41 = vector.multi_reduction <add>, %40, %cst_41 [1] : vector<6x8xf32> to vector<6xf32>
    %42 = vector.shape_cast %41 : vector<6xf32> to vector<6x1xf32>
    %cst_42 = arith.constant dense<0.000000e+00> : vector<1xf32>
    %43 = vector.multi_reduction <add>, %42, %cst_42 [0] : vector<6x1xf32> to vector<1xf32>
    %44 = vector.shape_cast %43 : vector<1xf32> to vector<1x1xf32>
    %cst_43 = arith.constant 4.800000e+01 : f32
    %45 = vector.broadcast %cst_43 : f32 to vector<1x1xf32>
    %46 = arith.divf %44, %45 : vector<1x1xf32>
    %47 = vector.broadcast %46 : vector<1x1xf32> to vector<6x8xf32>
    %48 = arith.subf %40, %47 : vector<6x8xf32>
    %49 = arith.mulf %48, %48 : vector<6x8xf32>
    %cst_44 = arith.constant dense<0.000000e+00> : vector<6xf32>
    %50 = vector.multi_reduction <add>, %49, %cst_44 [1] : vector<6x8xf32> to vector<6xf32>
    %51 = vector.shape_cast %50 : vector<6xf32> to vector<6x1xf32>
    %cst_45 = arith.constant dense<0.000000e+00> : vector<1xf32>
    %52 = vector.multi_reduction <add>, %51, %cst_45 [0] : vector<6x1xf32> to vector<1xf32>
    %53 = vector.shape_cast %52 : vector<1xf32> to vector<1x1xf32>
    %cst_46 = arith.constant 4.800000e+01 : f32
    %54 = vector.broadcast %cst_46 : f32 to vector<1x1xf32>
    %55 = arith.divf %53, %54 : vector<1x1xf32>
    %cst_47 = arith.constant 9.99999974E-6 : f32
    %56 = vector.broadcast %cst_47 : f32 to vector<1x1xf32>
    %57 = arith.addf %55, %56 : vector<1x1xf32>
    %58 = math.rsqrt %57 : vector<1x1xf32>
    %59 = vector.broadcast %58 : vector<1x1xf32> to vector<6x8xf32>
    %60 = arith.mulf %48, %59 : vector<6x8xf32>
    %c0_48 = arith.constant 0 : index
    %c0_49 = arith.constant 0 : index
    %61 = vector.load %arg4[%c0_48, %c0_49] : memref<6x8xf32, #tpu.memory_space<vmem>>, vector<6x8xf32>
    %62 = arith.mulf %60, %61 : vector<6x8xf32>
    %c0_50 = arith.constant 0 : index
    %c0_51 = arith.constant 0 : index
    %63 = vector.load %arg5[%c0_50, %c0_51] : memref<6x8xf32, #tpu.memory_space<vmem>>, vector<6x8xf32>
    %64 = arith.addf %62, %63 : vector<6x8xf32>
    %65 = math.tanh %64 : vector<6x8xf32>
    %c0_52 = arith.constant 0 : index
    %c0_53 = arith.constant 0 : index
    %66 = vector.load %arg6[%c0_52, %c0_53] : memref<6x6xf32, #tpu.memory_space<vmem>>, vector<6x6xf32>
    %cst_54 = arith.constant dense<0.000000e+00> : vector<6x8xf32>
    %67 = tpu.matmul %66, %65, %cst_54 {dimension_numbers = #tpu.dot_dimension_numbers<[1], [0], [0], [1], [0, 0, 1, 1], [], []>} : vector<6x6xf32>, vector<6x8xf32>, vector<6x8xf32> -> vector<6x8xf32>
    %68 = arith.negf %67 : vector<6x8xf32>
    %69 = math.exp %68 : vector<6x8xf32>
    %cst_55 = arith.constant 1.000000e+00 : f32
    %70 = vector.broadcast %cst_55 : f32 to vector<6x8xf32>
    %71 = arith.addf %70, %69 : vector<6x8xf32>
    %72 = arith.divf %70, %71 : vector<6x8xf32>
    %73 = vector.shape_cast %72 : vector<6x8xf32> to vector<6x8x1xf32>
    %74 = vector.broadcast %73 : vector<6x8x1xf32> to vector<6x8x64xf32>
    %75 = arith.mulf %1, %74 : vector<6x8x64xf32>
    %c0_56 = arith.constant 0 : index
    %c0_57 = arith.constant 0 : index
    %c0_58 = arith.constant 0 : index
    %c0_59 = arith.constant 0 : index
    %76 = vector.load %arg7[%c0_56, %c0_57, %c0_58, %c0_59] : memref<1x6x8x64xf32, #tpu.memory_space<vmem>>, vector<1x6x8x64xf32>
    %77 = vector.shape_cast %76 : vector<1x6x8x64xf32> to vector<6x8x64xf32>
    %78 = vector.shape_cast %75 : vector<6x8x64xf32> to vector<1x6x8x64xf32>
    tpu.vector_store %arg7[%c0_56, %c0_57, %c0_58, %c0_59], %78 {strides = array<i32>} : memref<1x6x8x64xf32, #tpu.memory_space<vmem>>, vector<1x6x8x64xf32>,
    return
  }
  func.func @transform_0(%arg0: i32) -> (i32, i32, i32, i32) {
    %c0_i32 = arith.constant 0 : i32
    %c0_i32_0 = arith.constant 0 : i32
    %c0_i32_1 = arith.constant 0 : i32
    %c0_i32_2 = arith.constant 0 : i32
    return %arg0, %c0_i32, %c0_i32_0, %c0_i32_1 : i32, i32, i32, i32
  }
  func.func @transform_1(%arg0: i32) -> (i32, i32, i32) {
    %c0_i32 = arith.constant 0 : i32
    %c0_i32_0 = arith.constant 0 : i32
    %c0_i32_1 = arith.constant 0 : i32
    %c0_i32_2 = arith.constant 0 : i32
    return %c0_i32, %c0_i32_0, %c0_i32_1 : i32, i32, i32
  }
  func.func @transform_2(%arg0: i32) -> (i32, i32, i32) {
    %c0_i32 = arith.constant 0 : i32
    %c0_i32_0 = arith.constant 0 : i32
    %c0_i32_1 = arith.constant 0 : i32
    %c0_i32_2 = arith.constant 0 : i32
    return %c0_i32, %c0_i32_0, %c0_i32_1 : i32, i32, i32
  }
  func.func @transform_3(%arg0: i32) -> (i32, i32) {
    %c0_i32 = arith.constant 0 : i32
    %c0_i32_0 = arith.constant 0 : i32
    %c0_i32_1 = arith.constant 0 : i32
    return %c0_i32, %c0_i32_0 : i32, i32
  }
  func.func @transform_4(%arg0: i32) -> (i32, i32) {
    %c0_i32 = arith.constant 0 : i32
    %c0_i32_0 = arith.constant 0 : i32
    %c0_i32_1 = arith.constant 0 : i32
    return %c0_i32, %c0_i32_0 : i32, i32
  }
  func.func @transform_5(%arg0: i32) -> (i32, i32) {
    %c0_i32 = arith.constant 0 : i32
    %c0_i32_0 = arith.constant 0 : i32
    %c0_i32_1 = arith.constant 0 : i32
    return %c0_i32, %c0_i32_0 : i32, i32
  }
  func.func @transform_6(%arg0: i32) -> (i32, i32, i32, i32) {
    %c0_i32 = arith.constant 0 : i32
    %c0_i32_0 = arith.constant 0 : i32
    %c0_i32_1 = arith.constant 0 : i32
    %c0_i32_2 = arith.constant 0 : i32
    return %arg0, %c0_i32, %c0_i32_0, %c0_i32_1 : i32, i32, i32, i32
  }
}

module attributes {stable_mosaic.version = 11 : i64} {
  func.func @_conv3x3_fused_kernel(%arg0: i32, %arg1: memref<1x54x512xf32, #tpu.memory_space<vmem>>, %arg2: memref<6x54xf32, #tpu.memory_space<vmem>>, %arg3: memref<6x1xf32, #tpu.memory_space<vmem>>, %arg4: memref<1x6x512xf32, #tpu.memory_space<vmem>>, %arg5: memref<1x6x512xf32, #tpu.memory_space<vmem>>) attributes {dimension_semantics = [#tpu.dimension_semantics<parallel>], iteration_bounds = array<i64: 2>, scalar_prefetch = 0 : i64, scratch_operands = 0 : i64, tpu.core_type = #tpu.core_type<tc>, window_params = [{transform_indices = @transform_0, window_bounds = array<i64: 1, 54, 512>}, {pipeline_mode = #tpu.pipeline_mode<synchronous>, transform_indices = @transform_1, window_bounds = array<i64: 6, 54>}, {pipeline_mode = #tpu.pipeline_mode<synchronous>, transform_indices = @transform_2, window_bounds = array<i64: 6, 1>}, {transform_indices = @transform_3, window_bounds = array<i64: 1, 6, 512>}, {transform_indices = @transform_4, window_bounds = array<i64: 1, 6, 512>}]} {
    %c0 = arith.constant 0 : index
    %c0_0 = arith.constant 0 : index
    %0 = vector.load %arg2[%c0, %c0_0] : memref<6x54xf32, #tpu.memory_space<vmem>>, vector<6x54xf32>
    %c0_1 = arith.constant 0 : index
    %c0_2 = arith.constant 0 : index
    %c0_3 = arith.constant 0 : index
    %1 = vector.load %arg1[%c0_1, %c0_2, %c0_3] : memref<1x54x512xf32, #tpu.memory_space<vmem>>, vector<1x54x512xf32>
    %2 = vector.shape_cast %1 : vector<1x54x512xf32> to vector<54x512xf32>
    %cst = arith.constant dense<0.000000e+00> : vector<6x512xf32>
    %3 = tpu.matmul %0, %2, %cst {dimension_numbers = #tpu.dot_dimension_numbers<[1], [0], [0], [1], [0, 0, 1, 1], [], []>} : vector<6x54xf32>, vector<54x512xf32>, vector<6x512xf32> -> vector<6x512xf32>
    %c0_4 = arith.constant 0 : index
    %c0_5 = arith.constant 0 : index
    %4 = vector.load %arg3[%c0_4, %c0_5] : memref<6x1xf32, #tpu.memory_space<vmem>>, vector<6x1xf32>
    %5 = vector.broadcast %4 : vector<6x1xf32> to vector<6x512xf32>
    %6 = arith.addf %3, %5 : vector<6x512xf32>
    %7 = math.tanh %6 : vector<6x512xf32>
    %c0_6 = arith.constant 0 : index
    %c0_7 = arith.constant 0 : index
    %c0_8 = arith.constant 0 : index
    %8 = vector.load %arg4[%c0_6, %c0_7, %c0_8] : memref<1x6x512xf32, #tpu.memory_space<vmem>>, vector<1x6x512xf32>
    %9 = vector.shape_cast %8 : vector<1x6x512xf32> to vector<6x512xf32>
    %10 = arith.addf %7, %9 : vector<6x512xf32>
    %c0_9 = arith.constant 0 : index
    %c0_10 = arith.constant 0 : index
    %c0_11 = arith.constant 0 : index
    %11 = vector.load %arg5[%c0_9, %c0_10, %c0_11] : memref<1x6x512xf32, #tpu.memory_space<vmem>>, vector<1x6x512xf32>
    %12 = vector.shape_cast %11 : vector<1x6x512xf32> to vector<6x512xf32>
    %13 = vector.shape_cast %10 : vector<6x512xf32> to vector<1x6x512xf32>
    tpu.vector_store %arg5[%c0_9, %c0_10, %c0_11], %13 {strides = array<i32>} : memref<1x6x512xf32, #tpu.memory_space<vmem>>, vector<1x6x512xf32>,
    return
  }
  func.func @transform_0(%arg0: i32) -> (i32, i32, i32) {
    %c0_i32 = arith.constant 0 : i32
    %c0_i32_0 = arith.constant 0 : i32
    %c0_i32_1 = arith.constant 0 : i32
    return %arg0, %c0_i32, %c0_i32_0 : i32, i32, i32
  }
  func.func @transform_1(%arg0: i32) -> (i32, i32) {
    %c0_i32 = arith.constant 0 : i32
    %c0_i32_0 = arith.constant 0 : i32
    %c0_i32_1 = arith.constant 0 : i32
    return %c0_i32, %c0_i32_0 : i32, i32
  }
  func.func @transform_2(%arg0: i32) -> (i32, i32) {
    %c0_i32 = arith.constant 0 : i32
    %c0_i32_0 = arith.constant 0 : i32
    %c0_i32_1 = arith.constant 0 : i32
    return %c0_i32, %c0_i32_0 : i32, i32
  }
  func.func @transform_3(%arg0: i32) -> (i32, i32, i32) {
    %c0_i32 = arith.constant 0 : i32
    %c0_i32_0 = arith.constant 0 : i32
    %c0_i32_1 = arith.constant 0 : i32
    return %arg0, %c0_i32, %c0_i32_0 : i32, i32, i32
  }
  func.func @transform_4(%arg0: i32) -> (i32, i32, i32) {
    %c0_i32 = arith.constant 0 : i32
    %c0_i32_0 = arith.constant 0 : i32
    %c0_i32_1 = arith.constant 0 : i32
    return %arg0, %c0_i32, %c0_i32_0 : i32, i32, i32
  }
}

</mosaic_0001>

<bundles_post_ra>
// kernel: tsm_block_adv_forward.2
= control target key start
LH: loop header
LB: loop body
LE: loop exit
PB: predicated region body
PF: predicated region fallthrough
CT: control target
= control target key end

     0   :  { %11 = vsyncpa [#allocation3], 0  ;;  %s2019_s0 = inlined_call_operand.vmem [shape: f32[2,6,8,64], index: 0, kind: input, shape index: {}]   ;;  %s2020_s1 = inlined_call_operand.hbm [shape: f32[5,6,6], index: 1, kind: input, shape index: {}]   ;;  %s2021_s2 = inlined_call_operand.hbm [shape: f32[5,8,8], index: 2, kind: input, shape index: {}]   ;;  %s2022_s3 = inlined_call_operand.hbm [shape: f32[6,8], index: 3, kind: input, shape index: {}]   ;;  %s2023_s4 = inlined_call_operand.hbm [shape: f32[6,8], index: 4, kind: input, shape index: {}]   ;;  %s2024_s5 = inlined_call_operand.vmem [shape: f32[6,6], index: 5, kind: input, shape index: {}]   ;;  %s2025_s6 = inlined_call_operand.vmem [shape: f32[2,6,8,64], index: 6, kind: output, shape index: {}]  }
   0x1   :  { %12 = vsyncpa [#allocation5], 0 }
   0x2   :  { %13 = vsyncpa [#allocation8], 0  ;;  %s1760_s21 = smov 0  }
   0x3 LB: > { %s1766_s22 = sadd.s32 4294967295, %s1715_s21   ;;  %p1405_p0 = scmp.ge.s32.totalorder %s1715_s21, 1  ;;  %s1715_s21 = sphi %s1760_s21, %s19_s21  }
   0x4   : > { %p181_p1 = scmp.lt.s32.totalorder %s1715_s21, 3  ;;  %p2026_p2 = scmp.eq.s32.totalorder %s1766_s22, 0 }
   0x5   : > { %s1717_s24 = smov [#allocation4]   ;;  %s1718_s26 = smov [#allocation2]  }
   0x6   : > { %p1771_p3 = pnand %p1405_p0, %p181_p1  ;;  %s206_s25 = sshll.u32 %s1717_s24, 4  ;;  %s1775_s25 = int_to_ptr.vmem [resolvable:$true] %s206_s25 }
   0x7   : > { %s193_s27 = sshll.u32 %s1718_s26, 4  ;;  %s1719_s29 = smov [#allocation6]   ;;  %s1779_s27 = int_to_ptr.vmem [resolvable:$true] %s193_s27 }
   0x8   : > { %s2028_s23 = scalar_select %p1771_p3, 1, 0 }
   0x9   : > { %p1540_p4 = pneg %p1771_p3  ;;  %s220_s30 = sshll.u32 %s1719_s29, 4  ;;  %s1787_s30 = int_to_ptr.vmem [resolvable:$true] %s220_s30 }
   0xa   : > { %s1720_s7 = smov [#allocation7]   ;;  %s1585_s11 = scalar_lea.hbm %s2021_s2, 640 }
   0xb   : > { %p1783_p5 = pnand %p2026_p2, %p1540_p4  ;;  %s1789_s8 = sshll.u32 %s1720_s7, 4  ;;  %s232_s8 = int_to_ptr.vmem [resolvable:$true] %s1789_s8 }
   0xc   : > { %p1586_p6 = scmp.ne.s32.totalorder %s2021_s2, %s1585_s11  ;;  %p1592_p10 = scmp.lt.u32.totalorder %s1585_s11, %s2021_s2 }
   0xd   : > { %p1799_p7 = pneg %p1783_p5 }
   0xf   : > { %p1588_p8 = pnand %p1799_p7, %p1586_p6 }
  0x11   : > { %p1589_p9 = pneg %p1588_p8 }
  0x13   : > { %p1594_p11 = pnand %p1592_p10, %p1589_p9 }
  0x15   : > { %1597 = shalt.err (!%p1594_p11)
}
  0x16   : > { %s1598_s17 = scalar_lea.vmem %s1775_s25, 640  ;;  %p1606_p1 = scmp.lt.s32.totalorder %s1775_s25, %s1775_s25 }
  0x17   : > { %p1599_p12 = scmp.ne.s32.totalorder %s1775_s25, %s1598_s17  ;;  %p1607_p4 = scmp.lt.s32.totalorder %s1598_s17, %s1598_s17 }
  0x19   : > { %p1601_p13 = pnand %p1599_p12, %p1799_p7  ;;  %p1608_p6 = por %p1607_p4, %p1606_p1 }
  0x1b   : > { %p1602_p0 = pneg %p1601_p13 }
  0x1d   : > { %p1609_p8 = pnand %p1608_p6, %p1602_p0 }
  0x1f   : > { %1612 = shalt.err (!%p1609_p8)
}
  0x20   : > { %s1721_s18 = smov 128   ;;  %s1722_s19 = smov 8  }
  0x21   : > { %1546 = dma.hbm_to_vmem [thread:$0]  (!%p1783_p5), %s2021_s2, 640, %s1775_s25, [#allocation5], %s1721_s18, %s1721_s18, %s1722_s19  }
  0x22   : > { %s1613_s7 = scalar_lea.hbm %s2020_s1, 640 }
  0x23   : > { %p1614_p9 = scmp.ne.s32.totalorder %s2020_s1, %s1613_s7  ;;  %p1620_p12 = scmp.lt.u32.totalorder %s1613_s7, %s2020_s1 }
  0x25   : > { %p1616_p10 = pnand %p1614_p9, %p1799_p7 }
  0x27   : > { %p1617_p11 = pneg %p1616_p10 }
  0x29   : > { %p1622_p13 = pnand %p1620_p12, %p1617_p11 }
  0x2b   : > { %1625 = shalt.err (!%p1622_p13)
}
  0x2c   : > { %s1626_s25 = scalar_lea.vmem %s1779_s27, 640  ;;  %p1634_p6 = scmp.lt.s32.totalorder %s1779_s27, %s1779_s27 }
  0x2d   : > { %p1627_p0 = scmp.ne.s32.totalorder %s1779_s27, %s1626_s25  ;;  %p1635_p8 = scmp.lt.s32.totalorder %s1626_s25, %s1626_s25 }
  0x2f   : > { %p1629_p1 = pnand %p1627_p0, %p1799_p7  ;;  %p1636_p9 = por %p1635_p8, %p1634_p6 }
  0x31   : > { %p1630_p4 = pneg %p1629_p1 }
  0x33   : > { %p1637_p10 = pnand %p1636_p9, %p1630_p4 }
  0x35   : > { %1640 = shalt.err (!%p1637_p10)
}
  0x36   : > { %1543 = dma.hbm_to_vmem [thread:$0]  (!%p1783_p5), %s2020_s1, 640, %s1779_s27, [#allocation3], %s1721_s18, %s1721_s18, %s1722_s19  }
  0x37   : > { %s1641_s20 = scalar_lea.hbm %s2022_s3, 128 }
  0x38   : > { %p1642_p11 = scmp.ne.s32.totalorder %s2022_s3, %s1641_s20  ;;  %p1648_p0 = scmp.lt.u32.totalorder %s1641_s20, %s2022_s3 }
  0x3a   : > { %p1644_p12 = pnand %p1642_p11, %p1799_p7 }
  0x3c   : > { %p1645_p13 = pneg %p1644_p12 }
  0x3e   : > { %p1650_p1 = pnand %p1648_p0, %p1645_p13 }
  0x40   : > { %1653 = shalt.err (!%p1650_p1)
}
  0x41   : > { %s1654_s27 = scalar_lea.vmem %s1787_s30, 128  ;;  %p1662_p9 = scmp.lt.s32.totalorder %s1787_s30, %s1787_s30 }
  0x42   : > { %p1655_p4 = scmp.ne.s32.totalorder %s1787_s30, %s1654_s27  ;;  %p1663_p10 = scmp.lt.s32.totalorder %s1654_s27, %s1654_s27 }
  0x44   : > { %p1657_p6 = pnand %p1655_p4, %p1799_p7  ;;  %p1664_p11 = por %p1663_p10, %p1662_p9 }
  0x46   : > { %p1658_p8 = pneg %p1657_p6 }
  0x48   : > { %p1665_p12 = pnand %p1664_p11, %p1658_p8 }
  0x4a   : > { %1668 = shalt.err (!%p1665_p12)
}
  0x4b   : > { %1549 = dma.hbm_to_vmem [thread:$0]  (!%p1783_p5), %s2022_s3, 128, %s1787_s30, [#allocation5]  }
  0x4c   : > { %s1669_s11 = scalar_lea.hbm %s2023_s4, 128 }
  0x4d   : > { %p1670_p13 = scmp.ne.s32.totalorder %s2023_s4, %s1669_s11  ;;  %p1676_p4 = scmp.lt.u32.totalorder %s1669_s11, %s2023_s4 }
  0x4f   : > { %p1672_p0 = pnand %p1670_p13, %p1799_p7 }
  0x51   : > { %p1673_p1 = pneg %p1672_p0 }
  0x53   : > { %p1678_p6 = pnand %p1676_p4, %p1673_p1 }
  0x55   : > { %1681 = shalt.err (!%p1678_p6)
}
  0x56   : > { %s1682_s16 = scalar_lea.vmem %s232_s8, 128  ;;  %p1690_p11 = scmp.lt.s32.totalorder %s232_s8, %s232_s8 }
  0x57   : > { %p1683_p8 = scmp.ne.s32.totalorder %s232_s8, %s1682_s16  ;;  %p1691_p12 = scmp.lt.s32.totalorder %s1682_s16, %s1682_s16 }
  0x59   : > { %p1685_p9 = pnand %p1683_p8, %p1799_p7  ;;  %p1692_p2 = por %p1691_p12, %p1690_p11 }
  0x5b   : > { %p1686_p10 = pneg %p1685_p9 }
  0x5d   : > { %p1693_p3 = pnand %p1692_p2, %p1686_p10 }
  0x5f   : > { %1696 = shalt.err (!%p1693_p3)
}
  0x60   : > { %1552 = dma.hbm_to_vmem [thread:$0]  (!%p1783_p5), %s2023_s4, 128, %s232_s8, [#allocation8]  }
  0x61   : > { %p2031_p13 = scmp.ne.s32.totalorder %s2028_s23, 0 }
  0x62   : > { %p2032_p0 = scmp.eq.s32.totalorder (!%p2031_p13), %s1766_s22, 0 }
  0x63   : > { %255 = sbr.rel (%p2031_p13) target bundleno = 1455 (0x5af), region = 44 }
  0x6a   : > { %1702 = dma.done.wait (%p2032_p0), [#allocation3], 640   ;;  %p2033_p7 = pmov %p2032_p0 }
  0x6b   : > { %p2034_p1 = pmov %p2032_p0 }
  0x6c   : > { %1704 = vsyncadd (%p2033_p7), [#allocation3], 4294966656 }
  0x6d   : > { %1706 = dma.done.wait (%p2034_p1), [#allocation5], 768   ;;  %p2035_p2 = pmov %p2032_p0 }
  0x6e   : > { %p2036_p3 = pmov %p2032_p0 }
  0x6f   : > { %1708 = vsyncadd (%p2035_p2), [#allocation5], 4294966528 }
  0x70   : > { %1710 = dma.done.wait (%p2036_p3), [#allocation8], 128   ;;  %p2037_p5 = pmov %p2032_p0 }
  0x71   : > { %p297_p4 = scmp.lt.s32.totalorder %s1766_s22, 1  ;;  %vm313_vm0 = vcmask 523264   ;;  %v1723_v12 = vmov 0.0   ;;  %v338_v13 = vld [vmem:[#allocation4] sm:$0xff]  ;;  %v456_v14 = vld [vmem:[#allocation4 + $0x8] sm:$0xff]  ;;  %vm1724_vm1 = vmmov 0   ;;  %v345_v15 = vlaneseq }
  0x72   : > { %1712 = vsyncadd (%p2037_p5), [#allocation8], 4294967168  ;;  %1460 = vmatprep.subr.mxu0 %v1723_v12  ;;  %1465 = vmatprep.subr.mxu1 %v1723_v12  ;;  %vm371_vm2 = vcmask 1041409   ;;  %vm373_vm3 = vcmask 1042434   ;;  %vm375_vm4 = vcmask 1043459   ;;  %vm377_vm5 = vcmask 1044484  }
  0x73   : > { %s2039_s22 = smov (!%p297_p4, %s1766_s22), 1  ;;  %1461 = vmatpush3.msra.mxu0 %v338_v13  ;;  %1462 = vmatprep.mubr.msk.f32.mxu0 %vm1724_vm1, %v1723_v12  ;;  %v346_v16 = vand.u32 127, %v345_v15  ;;  %v1941_v17 = vshrl.u32 %v345_v15, 7  ;;  %vm379_vm6 = vcmask 1045509   ;;  %vm381_vm7 = vcmask 64512   ;;  %v684_v41 = vld [vmem:[#allocation4 + $0x10] sm:$0xff] }
  0x74   : > { %s1523_s23 = smul.u32 48, %s2039_s22  ;;  %1466 = vmatpush3.msra.mxu1 %v456_v14  ;;  %1467 = vmatprep.mubr.msk.f32.mxu1 %vm1724_vm1, %v1723_v12  ;;  %v835_v43 = vld [vmem:[#allocation4 + $0x18] sm:$0xff]  ;;  %v986_v44 = vld [vmem:[#allocation4 + $0x20] sm:$0xff]  ;;  %vm533_vm8 = vcmask 1045504   ;;  %vm529_vm9 = vcmask 48128   ;;  %vm1136_vm10 = vcmask 62464  }
  0x75   : > { %1480 = vmatprep.subr.mxu1 %v1723_v12  ;;  %1470 = vmatprep.subr.mxu0 %v1723_v12  ;;  %v349_v20 = vsub.s32 %v346_v16, %v1941_v17  ;;  %v528_v45 = vld [vmem:[#allocation2 + $0x8] sm:$0x3f]  ;;  %v454_v52 = vld [vmem:[#allocation2] sm:$0x3f]  ;;  %v756_v57 = vld [vmem:[#allocation2 + $0x10] sm:$0x3f] }
  0x76   : > { %s301_s14 = scalar_lea.vmem %s2019_s0, %s1523_s23  ;;  %v907_v58 = vld [vmem:[#allocation2 + $0x18] sm:$0x3f]  ;;  %v1058_v59 = vld [vmem:[#allocation2 + $0x20] sm:$0x3f]  ;;  %s306_s7 = scalar_lea.vmem %s2025_s6, %s1523_s23 }
  0x77   : > { %v1909_v0 = vld [vmem:[%s301_s14] sm:$0xff]  ;;  %v1911_v1 = vld [vmem:[%s301_s14 + $0x10] sm:$0xff]  ;;  %v1913_v2 = vld [vmem:[%s301_s14 + $0x8] sm:$0xff] }
  0x78   : > { %v314_v3 = vsel %vm313_vm0, %v1909_v0, 0.0  ;;  %v320_v4 = vsel %vm313_vm0, %v1911_v1, 0.0  ;;  %v1919_v5 = vld [vmem:[%s301_s14 + $0x18] sm:$0xff]  ;;  %v317_v6 = vsel %vm313_vm0, %v1913_v2, 0.0  ;;  %v1925_v8 = vld [vmem:[%s301_s14 + $0x20] sm:$0xff]  ;;  %v1927_v9 = vld [vmem:[%s301_s14 + $0x28] sm:$0xff] }
  0x79   : > { %315 = vadd.xlane.f32.xlu0 %v314_v3  ;;  %321 = vadd.xlane.f32.xlu1 %v320_v4  ;;  %v323_v7 = vsel %vm313_vm0, %v1919_v5, 0.0  ;;  %v326_v10 = vsel %vm313_vm0, %v1925_v8, 0.0  ;;  %v329_v11 = vsel %vm313_vm0, %v1927_v9, 0.0 }
  0x7d   : > { %318 = vadd.xlane.f32.xlu0 %v317_v6  ;;  %324 = vadd.xlane.f32.xlu1 %v323_v7 }
  0x81   : > { %327 = vadd.xlane.f32.xlu0 %v326_v10  ;;  %330 = vadd.xlane.f32.xlu1 %v329_v11 }
 0x106   : > { %v316_v18 = vpop.xlane.xlu0 %315  ;;  %v322_v19 = vpop.xlane.xlu1 %321 }
 0x107   : > { %v332_v21 = vmul.f32 0.015625, %v316_v18  ;;  %v334_v22 = vmul.f32 0.015625, %v322_v19 }
 0x109   : > { %v350_v27 = vrot.slane %v332_v21, %v349_v20  ;;  %v358_v30 = vrot.slane %v334_v22, %v349_v20 }
 0x10a   : > { %v319_v23 = vpop.xlane.xlu0 %318  ;;  %v325_v24 = vpop.xlane.xlu1 %324 }
 0x10b   : > { %v333_v25 = vmul.f32 0.015625, %v319_v23  ;;  %v335_v26 = vmul.f32 0.015625, %v325_v24 }
 0x10d   : > { %v354_v28 = vrot.slane %v333_v25, %v349_v20  ;;  %v362_v29 = vrot.slane %v335_v26, %v349_v20 }
 0x10e   : > { %v328_v31 = vpop.xlane.xlu0 %327  ;;  %v331_v32 = vpop.xlane.xlu1 %330 }
 0x10f   : > { %v372_v33 = vsel %vm371_vm2, %v354_v28, %v350_v27  ;;  %v336_v34 = vmul.f32 0.015625, %v328_v31  ;;  %v337_v35 = vmul.f32 0.015625, %v331_v32  ;;  %v1167_v31 = vld [vmem:[#allocation7] sm:$0x3f] }
 0x110   : > { %v374_v36 = vsel %vm373_vm3, %v358_v30, %v372_v33 }
 0x111   : > { %v376_v37 = vsel %vm375_vm4, %v362_v29, %v374_v36  ;;  %v366_v38 = vrot.slane %v336_v34, %v349_v20  ;;  %v370_v39 = vrot.slane %v337_v35, %v349_v20  ;;  %v1165_v29 = vld [vmem:[#allocation6] sm:$0x3f]  ;;  %v1170_v34 = vld [vmem:[%s2024_s5] sm:$0x3f] }
 0x113   : > { %v378_v40 = vsel %vm377_vm5, %v366_v38, %v376_v37 }
 0x114   : > { %v380_v42 = vsel %vm379_vm6, %v370_v39, %v378_v40 }
 0x115   : > { %1463 = vmatmul.mubr.msk.f32.vlgmr.msra.gmra.mrb[0].mxu0 %vm381_vm7, %v380_v42  ;;  %1468 = vmatmul.mubr.msk.f32.vlgmr.msra.gmra.mrb[0].mxu1 %vm381_vm7, %v380_v42 }
 0x116   : > { %1481 = vmatpush3.msra.mxu1 %v684_v41  ;;  %1482 = vmatprep.mubr.msk.f32.mxu1 %vm1724_vm1, %v1723_v12  ;;  %v1262_v41 = vsub.s32 1, %v1941_v17 }
 0x117   : > { %1490 = vmatprep.subr.mxu1 %v1723_v12  ;;  %1472 = vmatprep.mubr.msk.f32.mxu0 %vm1724_vm1, %v1723_v12 }
 0x119   : > { %1483 = vmatmul.mubr.msk.f32.vlgmr.msra.gmra.mrb[2].mxu1 %vm381_vm7, %v380_v42 }
 0x11a   : > { %1491 = vmatpush3.msra.mxu1 %v835_v43  ;;  %1492 = vmatprep.mubr.msk.f32.mxu1 %vm1724_vm1, %v1723_v12 }
 0x11b   : > { %1500 = vmatprep.subr.mxu1 %v1723_v12 }
 0x11d   : > { %1493 = vmatmul.mubr.msk.f32.vlgmr.msra.gmra.mrb[4].mxu1 %vm381_vm7, %v380_v42 }
 0x11e   : > { %1501 = vmatpush3.msra.mxu1 %v986_v44  ;;  %1502 = vmatprep.mubr.msk.f32.mxu1 %vm1724_vm1, %v1723_v12 }
 0x11f   : > { %1510 = vmatprep.subr.mxu1 %v1723_v12 }
 0x121   : > { %1503 = vmatmul.mubr.msk.f32.vlgmr.msra.gmra.mrb[6].mxu1 %vm381_vm7, %v380_v42  ;;  %v1255_v42 = vsub.s32 0, %v1941_v17 }
 0x122   : > { %1512 = vmatprep.mubr.msk.f32.mxu1 %vm1724_vm1, %v1723_v12 }
 0x1e8   : > { %v450_v46 = vpop.f32.mrb[0].mxu0  ;;  %v523_v47 = vpop.f32.mrb[0].mxu1 }
 0x1e9   : > { %v1464_v48 = vpop.f32.mrb[1].mxu0  ;;  %v1469_v49 = vpop.f32.mrb[1].mxu1  ;;  %1471 = vmatpush3.msk.msra.mxu0 %vm533_vm8, %v523_v47  ;;  %v1283_v47 = vsub.s32 4, %v1941_v17 }
 0x1ea   : > { %1473 = vmatmul.mubr.msk.f32.vlgmr.msra.gmra.mrb[2].mxu0 %vm529_vm9, %v528_v45  ;;  %1475 = vmatprep.subr.mxu0 %v1723_v12 }
 0x1eb   : > { %1476 = vmatpush3.msk.msra.mxu0 %vm533_vm8, %v450_v46  ;;  %1477 = vmatprep.mubr.msk.f32.mxu0 %vm1724_vm1, %v1723_v12  ;;  %v1269_v46 = vsub.s32 2, %v1941_v17 }
 0x1ec   : > { %v751_v50 = vpop.f32.mrb[2].mxu1  ;;  %1485 = vmatprep.subr.mxu0 %v1723_v12 }
 0x1ed   : > { %v1484_v51 = vpop.f32.mrb[3].mxu1 }
 0x1f0   : > { %v902_v53 = vpop.f32.mrb[4].mxu1 }
 0x1f1   : > { %v1494_v54 = vpop.f32.mrb[5].mxu1 }
 0x1f2   : > { %1478 = vmatmul.mubr.msk.f32.vlgmr.msra.gmra.mrb[2].mxu0 %vm529_vm9, %v454_v52  ;;  %v1290_v52 = vsub.s32 5, %v1941_v17 }
 0x1f3   : > { %1486 = vmatpush3.msk.msra.mxu0 %vm533_vm8, %v751_v50  ;;  %1487 = vmatprep.mubr.msk.f32.mxu0 %vm1724_vm1, %v1723_v12  ;;  %v1276_v50 = vsub.s32 3, %v1941_v17 }
 0x1f4   : > { %v1053_v55 = vpop.f32.mrb[6].mxu1  ;;  %1495 = vmatprep.subr.mxu0 %v1723_v12 }
 0x1f5   : > { %v1504_v56 = vpop.f32.mrb[7].mxu1 }
 0x1fa   : > { %1488 = vmatmul.mubr.msk.f32.vlgmr.msra.gmra.mrb[2].mxu0 %vm529_vm9, %v756_v57 }
 0x1fb   : > { %1496 = vmatpush3.msk.msra.mxu0 %vm533_vm8, %v902_v53  ;;  %1497 = vmatprep.mubr.msk.f32.mxu0 %vm1724_vm1, %v1723_v12 }
 0x1fc   : > { %1505 = vmatprep.subr.mxu0 %v1723_v12 }
 0x202   : > { %1498 = vmatmul.mubr.msk.f32.vlgmr.msra.gmra.mrb[2].mxu0 %vm529_vm9, %v907_v58 }
 0x203   : > { %1506 = vmatpush3.msk.msra.mxu0 %vm533_vm8, %v1053_v55  ;;  %1507 = vmatprep.mubr.msk.f32.mxu0 %vm1724_vm1, %v1723_v12 }
 0x20a   : > { %1508 = vmatmul.mubr.msk.f32.vlgmr.msra.gmra.mrb[2].mxu0 %vm529_vm9, %v1058_v59 }
 0x2dd   : > { %v1131_v60 = vpop.f32.mrb[2].mxu0 }
 0x2de   : > { %v1509_v61 = vpop.f32.mrb[3].mxu0  ;;  %v1137_v62 = vsel %vm1136_vm10, %v1131_v60, 0.0 }
 0x2df   : > { %1138 = vadd.xlane.f32.xlu0 %v1137_v62 }
 0x36c   : > { %v1139_v63 = vpop.xlane.xlu0 %1138 }
 0x36d   : > { %v1140_v3 = vsel %vm533_vm8, %v1139_v63, 0.0 }
 0x36e   : > { %v1141_v4 = vrot.slane %v1140_v3, 4 }
 0x370   : > { %v1142_v6 = vadd.f32 %v1141_v4, %v1140_v3 }
 0x372   : > { %v1143_v7 = vrot.slane %v1142_v6, 2 }
 0x374   : > { %v1144_v10 = vadd.f32 %v1143_v7, %v1142_v6 }
 0x376   : > { %v1145_v11 = vrot.slane %v1144_v10, 1 }
 0x378   : > { %v1146_v13 = vadd.f32 %v1145_v11, %v1144_v10 }
 0x37a   : > { %v1148_v14 = vmul.f32 0.020833334, %v1146_v13 }
 0x37c   : > { %v1149_v12 = vsub.f32 %v1131_v60, %v1148_v14 }
 0x37e   : > { %v1150_v15 = vmul.f32 %v1149_v12, %v1149_v12 }
 0x380   : > { %v1151_v16 = vsel %vm1136_vm10, %v1150_v15, 0.0 }
 0x381   : > { %1152 = vadd.xlane.f32.xlu1 %v1151_v16 }
 0x40e   : > { %v1153_v18 = vpop.xlane.xlu1 %1152 }
 0x40f   : > { %v1154_v19 = vsel %vm533_vm8, %v1153_v18, 0.0 }
 0x410   : > { %v1155_v20 = vrot.slane %v1154_v19, 4 }
 0x412   : > { %v1156_v21 = vadd.f32 %v1155_v20, %v1154_v19 }
 0x414   : > { %v1157_v22 = vrot.slane %v1156_v21, 2 }
 0x416   : > { %v1158_v23 = vadd.f32 %v1157_v22, %v1156_v21 }
 0x418   : > { %v1159_v24 = vrot.slane %v1158_v23, 1 }
 0x41a   : > { %v1160_v25 = vadd.f32 %v1159_v24, %v1158_v23 }
 0x41c   : > { %v1161_v26 = vmul.f32 0.020833334, %v1160_v25 }
 0x41e   : > { %v1162_v27 = vadd.f32 1e-05, %v1161_v26 }
 0x420   : > { %1577 = vrsqrt.f32 %v1162_v27 }
 0x42a   : > { %v1578_v28 = vpop.eup %1577 }
 0x42b   : > { %v1164_v30 = vmul.f32 %v1578_v28, %v1149_v12 }
 0x42d   : > { %v1166_v32 = vmul.f32 %v1165_v29, %v1164_v30 }
 0x42f   : > { %v1168_v33 = vadd.f32 %v1167_v31, %v1166_v32 }
 0x431   : > { %1579 = vtanh.f32 %v1168_v33 }
 0x43b   : > { %v1580_v35 = vpop.eup %1579 }
 0x43c   : > { %1511 = vmatpush3.msk.msra.mxu1 %vm533_vm8, %v1580_v35 }
 0x43d   : > { %1513 = vmatmul.mubr.msk.f32.vlgmr.msra.gmra.mrb[8].mxu1 %vm529_vm9, %v1170_v34 }
 0x510   : > { %v1243_v36 = vpop.f32.mrb[8].mxu1 }
 0x511   : > { %v1435_v37 = vmul.f32 -1.442695, %v1243_v36  ;;  %v1514_v38 = vpop.f32.mrb[9].mxu1 }
 0x513   : > { %1581 = vpow2.f32 %v1435_v37 }
 0x51d   : > { %v1582_v39 = vpop.eup %1581 }
 0x51e   : > { %v1250_v40 = vadd.f32 1.0, %v1582_v39 }
 0x520   : > { %1583 = vrcp.f32 %v1250_v40 }
 0x52a   : > { %v1584_v43 = vpop.eup %1583 }
 0x52b   : > { %v1263_v44 = vrot.slane %v1584_v43, %v1262_v41  ;;  %v1256_v45 = vrot.slane %v1584_v43, %v1255_v42  ;;  %v1270_v48 = vrot.slane %v1584_v43, %v1269_v46  ;;  %v1284_v49 = vrot.slane %v1584_v43, %v1283_v47 }
 0x52c   : > { %v1277_v51 = vrot.slane %v1584_v43, %v1276_v50  ;;  %v1291_v53 = vrot.slane %v1584_v43, %v1290_v52 }
 0x52d   : > { %1265 = vbcast.lane.b32.xlu1 %v1263_v44, 256  ;;  %1258 = vbcast.lane.b32.xlu0 %v1256_v45, 256 }
 0x531   : > { %1272 = vbcast.lane.b32.xlu1 %v1270_v48, 256  ;;  %1286 = vbcast.lane.b32.xlu0 %v1284_v49, 256 }
 0x535   : > { %1279 = vbcast.lane.b32.xlu1 %v1277_v51, 256 }
 0x539   : > { %1293 = vbcast.lane.b32.xlu1 %v1291_v53, 256 }
 0x59f   : > { %v1266_v54 = vpop.permute.xlu1 %1265  ;;  %v1259_v55 = vpop.permute.xlu0 %1258 }
 0x5a0   : > { %v1296_v56 = vmul.f32 %v1266_v54, %v1913_v2  ;;  %v1295_v57 = vmul.f32 %v1259_v55, %v1909_v0 }
 0x5a2   : > { %1302 = vst.msk [vmem:[%s306_s7 + $0x8] sm:$0xff] %vm313_vm0, %v1296_v56  ;;  %1301 = vst.msk [vmem:[%s306_s7] sm:$0xff] %vm313_vm0, %v1295_v57 }
 0x5a3   : > { %v1273_v58 = vpop.permute.xlu1 %1272  ;;  %v1287_v17 = vpop.permute.xlu0 %1286 }
 0x5a4   : > { %v1297_v59 = vmul.f32 %v1273_v58, %v1911_v1  ;;  %v1299_v60 = vmul.f32 %v1287_v17, %v1925_v8 }
 0x5a6   : > { %1303 = vst.msk [vmem:[%s306_s7 + $0x10] sm:$0xff] %vm313_vm0, %v1297_v59  ;;  %1305 = vst.msk [vmem:[%s306_s7 + $0x20] sm:$0xff] %vm313_vm0, %v1299_v60 }
 0x5a7   : > { %v1280_v61 = vpop.permute.xlu1 %1279 }
 0x5a8   : > { %v1298_v62 = vmul.f32 %v1280_v61, %v1919_v5 }
 0x5aa   : > { %1304 = vst.msk [vmem:[%s306_s7 + $0x18] sm:$0xff] %vm313_vm0, %v1298_v62 }
 0x5ab   : > { %v1294_v0 = vpop.permute.xlu1 %1293 }
 0x5ac   : > { %v1300_v2 = vmul.f32 %v1294_v0, %v1927_v9 }
 0x5ae   : > { %1306 = vst.msk [vmem:[%s306_s7 + $0x28] sm:$0xff] %vm313_vm0, %v1300_v2 }
 0x5af PF: > { %s19_s21 = sadd.s32 1, %s1715_s21  }
 0x5b0   : > { %p16_p6 = scmp.ge.s32.totalorder %s19_s21, 4  }
 0x5b2   :  { %18 = sbr.rel (!%p16_p6) target bundleno = 3 (0x3), region = 99 }
 0x5b9   :  { %1328 = vsyncpa [#allocation3], 1 }
 0x5ba   :  { %1330 = vsyncpa [#allocation3 + $0x1], 1 }
 0x5bb   :  { %1331 = vsyncpa [#allocation5], 1 }
 0x5bc   :  { %1332 = vsyncpa [#allocation8], 1 }

// kernel: tsm_block_adv_forward.3
= control target key start
LH: loop header
LB: loop body
LE: loop exit
PB: predicated region body
PF: predicated region fallthrough
CT: control target
= control target key end

     0   :  { %s594_s15 = smov 0   ;;  %s654_s0 = inlined_call_operand.vmem [shape: f32[2,54,512], index: 0, kind: input, shape index: {}]   ;;  %s655_s1 = inlined_call_operand.vmem [shape: f32[6,54], index: 1, kind: input, shape index: {}]   ;;  %s656_s2 = inlined_call_operand.vmem [shape: f32[6,1], index: 2, kind: input, shape index: {}]   ;;  %s657_s3 = inlined_call_operand.vmem [shape: f32[2,6,512], index: 3, kind: input, shape index: {}]   ;;  %s658_s4 = inlined_call_operand.vmem [shape: f32[2,6,512], index: 4, kind: output, shape index: {}]  }
   0x1 LB: > { %s495_s16 = sadd.s32 4294967295, %s565_s15   ;;  %p499_p0 = scmp.ge.s32.totalorder %s565_s15, 1  ;;  %s565_s15 = sphi %s594_s15, %s14_s15  }
   0x2   : > { %p172_p1 = scmp.lt.s32.totalorder %s565_s15, 3 }
   0x4   : > { %p173_p2 = pnand %p499_p0, %p172_p1 }
   0x5   : > { %p203_p3 = scmp.lt.s32.totalorder (!%p173_p2), %s495_s16, 1  ;;  %v567_v0 = vmov (!%p173_p2), 0.0   ;;  %v247_v1 = vld [vmem:[%s656_s2] sm:$0x3f] (!%p173_p2)  ;;  %v568_v2 = vmov (!%p173_p2), 0   ;;  %vm257_vm0 = vcmask (!%p173_p2), 1045504  }
   0x6   : > { %176 = sbr.rel (%p173_p2) target bundleno = 266 (0x10a), region = 36  ;;  %334 = vmatprep.mubr.f32.mxu0 (!%p173_p2), %v567_v0  ;;  %405 = vmatprep.mubr.f32.mxu1 (!%p173_p2), %v567_v0  ;;  %v218_v43 = vld [vmem:[%s655_s1] sm:$0x3f] (!%p173_p2)  ;;  %vm253_vm1 = vcmask (!%p173_p2), 441344  }
   0x7   : > { %550 = vset.pattern.permute.xlu0 (!%p173_p2), %v568_v2 }
   0x8   : > { %250 = vperm.xlu0 (!%p173_p2), %550, %v247_v1  }
   0xd   : > { %s660_s16 = smov (!%p203_p3, %s495_s16), 1 }
   0xe   : > { %s539_s19 = smul.u32 224, %s660_s16  ;;  %s513_s25 = sshll.u32 %s660_s16, 5 }
   0xf   : > { %s212_s28 = scalar_lea.vmem %s657_s3, %s513_s25  ;;  %s217_s5 = scalar_lea.vmem %s658_s4, %s513_s25 }
  0x10   : > { %s611_s22 = scalar_lea.vmem %s654_s0, %s539_s19  ;;  %v416_v53 = vld [vmem:[%s212_s28] sm:$0x3f]  ;;  %v418_v54 = vld [vmem:[%s212_s28 + $0x10] sm:$0x3f]  ;;  %v417_v56 = vld [vmem:[%s212_s28 + $0x8] sm:$0x3f] }
  0x11   : > { %v220_v3 = vld [vmem:[%s611_s22 + $0x8] sm:$0xff]  ;;  %v222_v5 = vld [vmem:[%s611_s22 + $0x18] sm:$0xff]  ;;  %v219_v8 = vld [vmem:[%s611_s22] sm:$0xff] }
  0x12   : > { %v224_v4 = vld [vmem:[%s611_s22 + $0x28] sm:$0xff]  ;;  %v226_v7 = vld [vmem:[%s611_s22 + $0x38] sm:$0xff]  ;;  %v223_v9 = vld [vmem:[%s611_s22 + $0x20] sm:$0xff] }
  0x13   : > { %v515_v6 = vpack.c.bf16 %v224_v4, %v220_v3  ;;  %v527_v10 = vpack.c.bf16 %v226_v7, %v222_v5  ;;  %v517_v11 = vpack.c.bf16 %v223_v9, %v219_v8  ;;  %v221_v12 = vld [vmem:[%s611_s22 + $0x10] sm:$0xff]  ;;  %v228_v14 = vld [vmem:[%s611_s22 + $0x48] sm:$0xff]  ;;  %v230_v17 = vld [vmem:[%s611_s22 + $0x58] sm:$0xff] }
  0x14   : > { %v225_v13 = vld [vmem:[%s611_s22 + $0x30] sm:$0xff]  ;;  %v232_v16 = vld [vmem:[%s611_s22 + $0x68] sm:$0xff]  ;;  %v234_v18 = vld [vmem:[%s611_s22 + $0x78] sm:$0xff] }
  0x15   : > { %516 = vmatprep.subr.bf16.mxu0 %v515_v6  ;;  %v529_v15 = vpack.c.bf16 %v225_v13, %v221_v12  ;;  %528 = vmatprep.subr.bf16.mxu1 %v527_v10  ;;  %v519_v19 = vpack.c.bf16 %v232_v16, %v228_v14  ;;  %v531_v20 = vpack.c.bf16 %v234_v18, %v230_v17  ;;  %v227_v21 = vld [vmem:[%s611_s22 + $0x40] sm:$0xff]  ;;  %v229_v23 = vld [vmem:[%s611_s22 + $0x50] sm:$0xff]  ;;  %v236_v26 = vld [vmem:[%s611_s22 + $0x88] sm:$0xff] }
  0x16   : > { %518 = vmatpush1.bf16.msra.mxu0 %v517_v11  ;;  %v231_v22 = vld [vmem:[%s611_s22 + $0x60] sm:$0xff]  ;;  %v233_v25 = vld [vmem:[%s611_s22 + $0x70] sm:$0xff]  ;;  %v240_v27 = vld [vmem:[%s611_s22 + $0xa8] sm:$0xff] }
  0x17   : > { %530 = vmatpush1.bf16.msra.mxu1 %v529_v15  ;;  %v521_v24 = vpack.c.bf16 %v231_v22, %v227_v21  ;;  %520 = vmatprep.subr.bf16.mxu0 %v519_v19  ;;  %v533_v28 = vpack.c.bf16 %v233_v25, %v229_v23  ;;  %v523_v29 = vpack.c.bf16 %v240_v27, %v236_v26  ;;  %v238_v30 = vld [vmem:[%s611_s22 + $0x98] sm:$0xff]  ;;  %v235_v32 = vld [vmem:[%s611_s22 + $0x80] sm:$0xff]  ;;  %v237_v35 = vld [vmem:[%s611_s22 + $0x90] sm:$0xff] }
  0x18   : > { %532 = vmatprep.subr.bf16.mxu1 %v531_v20  ;;  %v242_v31 = vld [vmem:[%s611_s22 + $0xb8] sm:$0xff]  ;;  %v239_v34 = vld [vmem:[%s611_s22 + $0xa0] sm:$0xff]  ;;  %v241_v36 = vld [vmem:[%s611_s22 + $0xb0] sm:$0xff] }
  0x19   : > { %v535_v33 = vpack.c.bf16 %v242_v31, %v238_v30  ;;  %v525_v37 = vpack.c.bf16 %v239_v34, %v235_v32  ;;  %v537_v38 = vpack.c.bf16 %v241_v36, %v237_v35  ;;  %v244_v39 = vld [vmem:[%s611_s22 + $0xc8] sm:$0x3f]  ;;  %v246_v40 = vld [vmem:[%s611_s22 + $0xd8] sm:$0x3f]  ;;  %v243_v41 = vld [vmem:[%s611_s22 + $0xc0] sm:$0x3f] }
  0x1a   : > { %522 = vmatpush1.bf16.msra.mxu0 %v521_v24  ;;  %v245_v42 = vld [vmem:[%s611_s22 + $0xd0] sm:$0x3f]  ;;  %v419_v59 = vld [vmem:[%s212_s28 + $0x18] sm:$0x3f] }
  0x1b   : > { %534 = vmatpush1.bf16.msra.mxu1 %v533_v28  ;;  %524 = vmatprep.subr.bf16.mxu0 %v523_v29 }
  0x1c   : > { %536 = vmatprep.subr.bf16.mxu1 %v535_v33 }
  0x1e   : > { %526 = vmatpush1.bf16.msra.mxu0 %v525_v37 }
  0x1f   : > { %538 = vmatpush1.bf16.msra.mxu1 %v537_v38  ;;  %505 = vmatprep.subr.msk.mxu0 %vm257_vm0, %v244_v39 }
  0x20   : > { %508 = vmatprep.subr.msk.mxu1 %vm257_vm0, %v246_v40 }
  0x22   : > { %506 = vmatpush1.msk.msra.mxu0 %vm257_vm0, %v243_v41 }
  0x23   : > { %509 = vmatpush1.msk.msra.mxu1 %vm257_vm0, %v245_v42  ;;  %507 = vmatmul.mubr.msk.f32.vlgmr.msra.gmra.mrb[0].mxu0 %vm253_vm1, %v218_v43 }
  0x24   : > { %510 = vmatmul.mubr.msk.f32.vlgmr.msra.gmra.mrb[0].mxu1 %vm253_vm1, %v218_v43 }
  0x87   : > { %v251_v44 = vpop.permute.xlu0 %250 }
  0xf6   : > { %v336_v45 = vpop.f32.mrb[0].mxu0 }
  0xf7   : > { %v337_v46 = vadd.f32 %v336_v45, %v251_v44  ;;  %v407_v47 = vpop.f32.mrb[0].mxu1  ;;  %v338_v48 = vpop.f32.mrb[1].mxu0 }
  0xf8   : > { %v408_v49 = vadd.f32 %v407_v47, %v251_v44  ;;  %v339_v50 = vadd.f32 %v338_v48, %v251_v44  ;;  %v409_v51 = vpop.f32.mrb[1].mxu1 }
  0xf9   : > { %551 = vtanh.f32 %v337_v46  ;;  %v410_v52 = vadd.f32 %v409_v51, %v251_v44 }
  0xfa   : > { %553 = vtanh.f32 %v408_v49 }
  0xfb   : > { %555 = vtanh.f32 %v339_v50 }
  0xfc   : > { %557 = vtanh.f32 %v410_v52 }
 0x103   : > { %v552_v55 = vpop.eup %551 }
 0x104   : > { %v554_v57 = vpop.eup %553  ;;  %v420_v58 = vadd.f32 %v552_v55, %v416_v53 }
 0x105   : > { %v556_v60 = vpop.eup %555  ;;  %v422_v61 = vadd.f32 %v554_v57, %v418_v54 }
 0x106   : > { %v558_v62 = vpop.eup %557  ;;  %424 = vst [vmem:[%s217_s5] sm:$0x3f] %v420_v58  ;;  %v421_v63 = vadd.f32 %v556_v60, %v417_v56 }
 0x107   : > { %426 = vst [vmem:[%s217_s5 + $0x10] sm:$0x3f] %v422_v61  ;;  %v423_v0 = vadd.f32 %v558_v62, %v419_v59 }
 0x108   : > { %425 = vst [vmem:[%s217_s5 + $0x8] sm:$0x3f] %v421_v63 }
 0x109   : > { %427 = vst [vmem:[%s217_s5 + $0x18] sm:$0x3f] %v423_v0 }
 0x10a PF: > { %s14_s15 = sadd.s32 1, %s565_s15  }
 0x10b   : > { %p11_p4 = scmp.ge.s32.totalorder %s14_s15, 4  }
 0x10d   :  { %13 = sbr.rel (!%p11_p4) target bundleno = 1 (0x1), region = 69 }

</bundles_post_ra>
